<compile_context>
chip_gen: v5e
topology: v5e:2x2
jax: 0.10.0
libtpu: 0.0.40
codegen_flags: <defaults>
</compile_context>

<pallas_src>
import jax
import jax.numpy as jnp
import numpy as np
from jax.experimental import pallas as pl
from jax.experimental.pallas import tpu as pltpu

LANE = 128
SUBLANE = 8
TK = 512  # K-chunk for the layer-1 reduction: 3072 / 512 = 6 grid steps


def mlp_kernel(x_ref, w1_ref, b1_ref, w2_ref, b2_ref, w3_ref, b3_ref,
               o_ref, acc_ref):
    k = pl.program_id(0)

    @pl.when(k == 0)
    def _():
        acc_ref[...] = jnp.zeros_like(acc_ref)

    # Layer-1 partial product: (B, TK) bf16 @ (TK, 128) bf16 -> f32 accumulator.
    acc_ref[...] += jnp.dot(x_ref[...], w1_ref[...],
                            preferred_element_type=jnp.float32)

    @pl.when(k == pl.num_programs(0) - 1)
    def _():
        # Layer 1 epilogue: bias + ReLU, cast back to bf16 for the MXU.
        h1 = jnp.maximum(acc_ref[...] + b1_ref[...], 0.0).astype(jnp.bfloat16)
        # Layer 2: (B,128) @ (128,128 padded) + bias -> ReLU.
        h2 = jnp.dot(h1, w2_ref[...], preferred_element_type=jnp.float32)
        h2 = jnp.maximum(h2 + b2_ref[...], 0.0).astype(jnp.bfloat16)
        # Layer 3: (B,128) @ (128,128 padded) + bias; lane-dense (128-wide) store.
        out = jnp.dot(h2, w3_ref[...], preferred_element_type=jnp.float32)
        o_ref[...] = (out + b3_ref[...]).astype(o_ref.dtype)


def _pad_to(a, shape):
    pads = [(0, s - d) for d, s in zip(a.shape, shape)]
    return jnp.pad(a, pads)


@jax.jit
def mlp_forward(x, w1, b1, w2, b2, w3, b3):
    """x: (B, 3072) f32. Weights stored [in, out] (= PyTorch W.T), biases 1-D."""
    B, K = x.shape
    H1 = w1.shape[1]      # 128
    H2 = w2.shape[1]      # 64
    OUT = w3.shape[1]     # 10

    # Pad batch to a sublane multiple; pad narrow lane dims to a full 128 lanes.
    Bp = max(SUBLANE, ((B + SUBLANE - 1) // SUBLANE) * SUBLANE)
    H2p = LANE
    OUTp = LANE

    x_p = _pad_to(x, (Bp, K)).astype(jnp.bfloat16)
    w1_b = w1.astype(jnp.bfloat16)                                   # (3072, 128)
    b1_p = b1.reshape(1, H1).astype(jnp.float32)                     # (1, 128)
    w2_p = _pad_to(w2, (H1, H2p)).astype(jnp.bfloat16)               # (128, 128)
    b2_p = _pad_to(b2.reshape(1, H2), (1, H2p)).astype(jnp.float32)  # (1, 128)
    w3_p = _pad_to(w3, (H2p, OUTp)).astype(jnp.bfloat16)             # (128, 128)
    b3_p = _pad_to(b3.reshape(1, OUT), (1, OUTp)).astype(jnp.float32)

    n_k = K // TK
    cost = pl.CostEstimate(
        flops=2 * Bp * (K * H1 + H1 * H2p + H2p * OUTp),
        transcendentals=0,
        bytes_accessed=(x_p.size + w1_b.size + w2_p.size + w3_p.size) * 2
        + (b1_p.size + b2_p.size + b3_p.size) * 4 + Bp * OUTp * 4,
    )

    out_p = pl.pallas_call(
        mlp_kernel,
        out_shape=jax.ShapeDtypeStruct((Bp, OUTp), jnp.float32),
        grid_spec=pltpu.PrefetchScalarGridSpec(
            num_scalar_prefetch=0,
            grid=(n_k,),
            in_specs=[
                pl.BlockSpec((Bp, TK), lambda k: (0, k)),     # x K-chunk (streamed)
                pl.BlockSpec((TK, H1), lambda k: (k, 0)),     # w1 K-chunk (streamed)
                pl.BlockSpec((1, H1), lambda k: (0, 0)),      # b1 (resident)
                pl.BlockSpec((H1, H2p), lambda k: (0, 0)),    # w2 (resident)
                pl.BlockSpec((1, H2p), lambda k: (0, 0)),     # b2 (resident)
                pl.BlockSpec((H2p, OUTp), lambda k: (0, 0)),  # w3 (resident)
                pl.BlockSpec((1, OUTp), lambda k: (0, 0)),    # b3 (resident)
            ],
            out_specs=pl.BlockSpec((Bp, OUTp), lambda k: (0, 0)),
            scratch_shapes=[pltpu.VMEM((Bp, H1), jnp.float32)],
        ),
        compiler_params=pltpu.CompilerParams(
            dimension_semantics=("arbitrary",)),
        cost_estimate=cost,
    )(x_p, w1_b, b1_p, w2_p, b2_p, w3_p, b3_p)

    return out_p[:B, :OUT]


def init_linear(key, in_features, out_features):
    # Mimic PyTorch nn.Linear default init: U(-1/sqrt(fan_in), 1/sqrt(fan_in)).
    kw, kb = jax.random.split(key)
    bound = 1.0 / np.sqrt(in_features)
    # Stored as [in_features, out_features] (W.T relative to PyTorch layout).
    w = jax.random.uniform(kw, (in_features, out_features), jnp.float32, -bound, bound)
    b = jax.random.uniform(kb, (out_features,), jnp.float32, -bound, bound)
    return w, b


if __name__ == "__main__":
    key = jax.random.PRNGKey(0)
    kx, k1, k2, k3 = jax.random.split(key, 4)

    B = 8  # small batch
    x = jax.random.normal(kx, (B, 3072), dtype=jnp.float32)

    w1, b1 = init_linear(k1, 3072, 128)
    w2, b2 = init_linear(k2, 128, 64)
    w3, b3 = init_linear(k3, 64, 10)

    out = mlp_forward(x, w1, b1, w2, b2, w3, b3)
    out = jax.block_until_ready(out)

    # Pure-JAX f32 reference; tolerance loosened for the intentional bf16 input cast.
    ref = jnp.maximum(x @ w1 + b1, 0.0)
    ref = jnp.maximum(ref @ w2 + b2, 0.0)
    ref = ref @ w3 + b3
    np.testing.assert_allclose(np.asarray(out), np.asarray(ref), rtol=2e-2, atol=2e-2)

    print("KERNEL_OK")
</pallas_src>

<mosaic_0001>
module attributes {stable_mosaic.version = 11 : i64} {
  func.func @mlp_kernel(%arg0: i32, %arg1: memref<8x512xbf16, #tpu.memory_space<vmem>>, %arg2: memref<512x128xbf16, #tpu.memory_space<vmem>>, %arg3: memref<1x128xf32, #tpu.memory_space<vmem>>, %arg4: memref<128x128xbf16, #tpu.memory_space<vmem>>, %arg5: memref<1x128xf32, #tpu.memory_space<vmem>>, %arg6: memref<128x128xbf16, #tpu.memory_space<vmem>>, %arg7: memref<1x128xf32, #tpu.memory_space<vmem>>, %arg8: memref<8x128xf32, #tpu.memory_space<vmem>>, %arg9: memref<8x128xf32, #tpu.memory_space<vmem>>) attributes {dimension_semantics = [#tpu.dimension_semantics<arbitrary>], iteration_bounds = array<i64: 6>, scalar_prefetch = 0 : i64, scratch_operands = 1 : i64, tpu.core_type = #tpu.core_type<tc>, window_params = [{transform_indices = @transform_0, window_bounds = array<i64: 8, 512>}, {transform_indices = @transform_1, window_bounds = array<i64: 512, 128>}, {pipeline_mode = #tpu.pipeline_mode<synchronous>, transform_indices = @transform_2, window_bounds = array<i64: 1, 128>}, {pipeline_mode = #tpu.pipeline_mode<synchronous>, transform_indices = @transform_3, window_bounds = array<i64: 128, 128>}, {pipeline_mode = #tpu.pipeline_mode<synchronous>, transform_indices = @transform_4, window_bounds = array<i64: 1, 128>}, {pipeline_mode = #tpu.pipeline_mode<synchronous>, transform_indices = @transform_5, window_bounds = array<i64: 128, 128>}, {pipeline_mode = #tpu.pipeline_mode<synchronous>, transform_indices = @transform_6, window_bounds = array<i64: 1, 128>}, {pipeline_mode = #tpu.pipeline_mode<synchronous>, transform_indices = @transform_7, window_bounds = array<i64: 8, 128>}]} {
    %c0_i32 = arith.constant 0 : i32
    %0 = arith.cmpi eq, %arg0, %c0_i32 : i32
    %1 = arith.extui %0 : i1 to i32
    %c0_i32_0 = arith.constant 0 : i32
    %2 = arith.cmpi ne, %1, %c0_i32_0 : i32
    scf.if %2 {
      %cst_9 = arith.constant 0.000000e+00 : f32
      %12 = vector.broadcast %cst_9 : f32 to vector<8x128xf32>
      %c0_10 = arith.constant 0 : index
      %c0_11 = arith.constant 0 : index
      %13 = vector.load %arg9[%c0_10, %c0_11] : memref<8x128xf32, #tpu.memory_space<vmem>>, vector<8x128xf32>
      tpu.vector_store %arg9[%c0_10, %c0_11], %12 {strides = array<i32>} : memref<8x128xf32, #tpu.memory_space<vmem>>, vector<8x128xf32>,
    } else {
    }
    %c0 = arith.constant 0 : index
    %c0_1 = arith.constant 0 : index
    %3 = vector.load %arg9[%c0, %c0_1] : memref<8x128xf32, #tpu.memory_space<vmem>>, vector<8x128xf32>
    %c0_2 = arith.constant 0 : index
    %c0_3 = arith.constant 0 : index
    %4 = vector.load %arg1[%c0_2, %c0_3] : memref<8x512xbf16, #tpu.memory_space<vmem>>, vector<8x512xbf16>
    %c0_4 = arith.constant 0 : index
    %c0_5 = arith.constant 0 : index
    %5 = vector.load %arg2[%c0_4, %c0_5] : memref<512x128xbf16, #tpu.memory_space<vmem>>, vector<512x128xbf16>
    %cst = arith.constant dense<0.000000e+00> : vector<8x128xf32>
    %6 = tpu.matmul %4, %5, %cst {dimension_numbers = #tpu.dot_dimension_numbers<[1], [0], [0], [1], [0, 0, 1, 1], [], []>} : vector<8x512xbf16>, vector<512x128xbf16>, vector<8x128xf32> -> vector<8x128xf32>
    %7 = arith.addf %3, %6 : vector<8x128xf32>
    %c0_6 = arith.constant 0 : index
    %c0_7 = arith.constant 0 : index
    %8 = vector.load %arg9[%c0_6, %c0_7] : memref<8x128xf32, #tpu.memory_space<vmem>>, vector<8x128xf32>
    tpu.vector_store %arg9[%c0_6, %c0_7], %7 {strides = array<i32>} : memref<8x128xf32, #tpu.memory_space<vmem>>, vector<8x128xf32>,
    %c5_i32 = arith.constant 5 : i32
    %9 = arith.cmpi eq, %arg0, %c5_i32 : i32
    %10 = arith.extui %9 : i1 to i32
    %c0_i32_8 = arith.constant 0 : i32
    %11 = arith.cmpi ne, %10, %c0_i32_8 : i32
    scf.if %11 {
      %c0_9 = arith.constant 0 : index
      %c0_10 = arith.constant 0 : index
      %12 = vector.load %arg9[%c0_9, %c0_10] : memref<8x128xf32, #tpu.memory_space<vmem>>, vector<8x128xf32>
      %c0_11 = arith.constant 0 : index
      %c0_12 = arith.constant 0 : index
      %13 = vector.load %arg3[%c0_11, %c0_12] : memref<1x128xf32, #tpu.memory_space<vmem>>, vector<1x128xf32>
      %14 = vector.broadcast %13 : vector<1x128xf32> to vector<8x128xf32>
      %15 = arith.addf %12, %14 : vector<8x128xf32>
      %cst_13 = arith.constant 0.000000e+00 : f32
      %16 = vector.broadcast %cst_13 : f32 to vector<8x128xf32>
      %17 = arith.maximumf %15, %16 : vector<8x128xf32>
      %18 = arith.truncf %17 : vector<8x128xf32> to vector<8x128xbf16>
      %c0_14 = arith.constant 0 : index
      %c0_15 = arith.constant 0 : index
      %19 = vector.load %arg4[%c0_14, %c0_15] : memref<128x128xbf16, #tpu.memory_space<vmem>>, vector<128x128xbf16>
      %cst_16 = arith.constant dense<0.000000e+00> : vector<8x128xf32>
      %20 = tpu.matmul %18, %19, %cst_16 {dimension_numbers = #tpu.dot_dimension_numbers<[1], [0], [0], [1], [0, 0, 1, 1], [], []>} : vector<8x128xbf16>, vector<128x128xbf16>, vector<8x128xf32> -> vector<8x128xf32>
      %c0_17 = arith.constant 0 : index
      %c0_18 = arith.constant 0 : index
      %21 = vector.load %arg5[%c0_17, %c0_18] : memref<1x128xf32, #tpu.memory_space<vmem>>, vector<1x128xf32>
      %22 = vector.broadcast %21 : vector<1x128xf32> to vector<8x128xf32>
      %23 = arith.addf %20, %22 : vector<8x128xf32>
      %cst_19 = arith.constant 0.000000e+00 : f32
      %24 = vector.broadcast %cst_19 : f32 to vector<8x128xf32>
      %25 = arith.maximumf %23, %24 : vector<8x128xf32>
      %26 = arith.truncf %25 : vector<8x128xf32> to vector<8x128xbf16>
      %c0_20 = arith.constant 0 : index
      %c0_21 = arith.constant 0 : index
      %27 = vector.load %arg6[%c0_20, %c0_21] : memref<128x128xbf16, #tpu.memory_space<vmem>>, vector<128x128xbf16>
      %cst_22 = arith.constant dense<0.000000e+00> : vector<8x128xf32>
      %28 = tpu.matmul %26, %27, %cst_22 {dimension_numbers = #tpu.dot_dimension_numbers<[1], [0], [0], [1], [0, 0, 1, 1], [], []>} : vector<8x128xbf16>, vector<128x128xbf16>, vector<8x128xf32> -> vector<8x128xf32>
      %c0_23 = arith.constant 0 : index
      %c0_24 = arith.constant 0 : index
      %29 = vector.load %arg7[%c0_23, %c0_24] : memref<1x128xf32, #tpu.memory_space<vmem>>, vector<1x128xf32>
      %30 = vector.broadcast %29 : vector<1x128xf32> to vector<8x128xf32>
      %31 = arith.addf %28, %30 : vector<8x128xf32>
      %c0_25 = arith.constant 0 : index
      %c0_26 = arith.constant 0 : index
      %32 = vector.load %arg8[%c0_25, %c0_26] : memref<8x128xf32, #tpu.memory_space<vmem>>, vector<8x128xf32>
      tpu.vector_store %arg8[%c0_25, %c0_26], %31 {strides = array<i32>} : memref<8x128xf32, #tpu.memory_space<vmem>>, vector<8x128xf32>,
    } else {
    }
    return
  }
  func.func @transform_0(%arg0: i32) -> (i32, i32) {
    %c0_i32 = arith.constant 0 : i32
    %c0_i32_0 = arith.constant 0 : i32
    return %c0_i32, %arg0 : i32, i32
  }
  func.func @transform_1(%arg0: i32) -> (i32, i32) {
    %c0_i32 = arith.constant 0 : i32
    %c0_i32_0 = arith.constant 0 : i32
    return %arg0, %c0_i32 : i32, i32
  }
  func.func @transform_2(%arg0: i32) -> (i32, i32) {
    %c0_i32 = arith.constant 0 : i32
    %c0_i32_0 = arith.constant 0 : i32
    %c0_i32_1 = arith.constant 0 : i32
    return %c0_i32, %c0_i32_0 : i32, i32
  }
  func.func @transform_3(%arg0: i32) -> (i32, i32) {
    %c0_i32 = arith.constant 0 : i32
    %c0_i32_0 = arith.constant 0 : i32
    %c0_i32_1 = arith.constant 0 : i32
    return %c0_i32, %c0_i32_0 : i32, i32
  }
  func.func @transform_4(%arg0: i32) -> (i32, i32) {
    %c0_i32 = arith.constant 0 : i32
    %c0_i32_0 = arith.constant 0 : i32
    %c0_i32_1 = arith.constant 0 : i32
    return %c0_i32, %c0_i32_0 : i32, i32
  }
  func.func @transform_5(%arg0: i32) -> (i32, i32) {
    %c0_i32 = arith.constant 0 : i32
    %c0_i32_0 = arith.constant 0 : i32
    %c0_i32_1 = arith.constant 0 : i32
    return %c0_i32, %c0_i32_0 : i32, i32
  }
  func.func @transform_6(%arg0: i32) -> (i32, i32) {
    %c0_i32 = arith.constant 0 : i32
    %c0_i32_0 = arith.constant 0 : i32
    %c0_i32_1 = arith.constant 0 : i32
    return %c0_i32, %c0_i32_0 : i32, i32
  }
  func.func @transform_7(%arg0: i32) -> (i32, i32) {
    %c0_i32 = arith.constant 0 : i32
    %c0_i32_0 = arith.constant 0 : i32
    %c0_i32_1 = arith.constant 0 : i32
    return %c0_i32, %c0_i32_0 : i32, i32
  }
}

</mosaic_0001>

<bundles_post_ra>
// kernel: mlp_forward.1
= control target key start
LH: loop header
LB: loop body
LE: loop exit
PB: predicated region body
PF: predicated region fallthrough
CT: control target
= control target key end

     0   :  { %12 = vsyncpa [#allocation4], 0  ;;  %s1213_s24 = smov 0   ;;  %s1335_s0 = inlined_call_operand.vmem [shape: bf16[8,3072], index: 0, kind: input, shape index: {}]   ;;  %s1336_s1 = inlined_call_operand.vmem [shape: bf16[3072,128], index: 1, kind: input, shape index: {}]   ;;  %s1337_s2 = inlined_call_operand.vmem [shape: f32[1,128], index: 2, kind: input, shape index: {}]   ;;  %s1338_s3 = inlined_call_operand.vmem [shape: bf16[128,128], index: 3, kind: input, shape index: {}]   ;;  %s1339_s4 = inlined_call_operand.vmem [shape: f32[1,128], index: 4, kind: input, shape index: {}]   ;;  %s1340_s5 = inlined_call_operand.vmem [shape: bf16[128,128], index: 5, kind: input, shape index: {}]   ;;  %s1341_s6 = inlined_call_operand.vmem [shape: f32[1,128], index: 6, kind: input, shape index: {}]   ;;  %s1342_s7 = inlined_call_operand.hbm [shape: f32[8,128], index: 7, kind: output, shape index: {}]  }
   0x1 LB: > { %s1219_s25 = sadd.s32 4294967295, %s1169_s24   ;;  %p861_p0 = scmp.ge.s32.totalorder %s1169_s24, 1  ;;  %s1169_s24 = sphi %s1213_s24, %s18_s24  }
   0x2   : > { %p245_p1 = scmp.lt.s32.totalorder %s1169_s24, 7 }
   0x4   : > { %p246_p2 = pnand %p861_p0, %p245_p1 }
   0x5   : > { %s862_s26 = sshll.u32 (!%p246_p2), %s1219_s25, 2  ;;  %s864_s27 = sshll.u32 (!%p246_p2), %s1219_s25, 6 }
   0x6   : > { %249 = sbr.rel (%p246_p2) target bundleno = 499 (0x1f3), region = 48  ;;  %p278_p3 = scmp.lt.s32.totalorder (!%p246_p2), %s862_s26, 23 }
   0x7   : > { %p284_p4 = scmp.lt.s32.totalorder (!%p246_p2), %s864_s27, 383  ;;  %p866_p5 = scmp.ne.s32.totalorder (!%p246_p2), %s1219_s25, 0 }
   0xb   : > { %s1344_s26 = smov (!%p278_p3, %s862_s26), 23  ;;  %s1346_s27 = smov (!%p284_p4, %s864_s27), 383 }
   0xc   : > { %s863_s28 = sshll.u32 %s1344_s26, 2  ;;  %s865_s9 = sshll.u32 %s1346_s27, 2 }
   0xd   : > { %s1228_s8 = scalar_lea.vmem %s1335_s0, %s863_s28  ;;  %s1233_s12 = scalar_lea.vmem %s1336_s1, %s865_s9 }
   0xe   : > { %292 = sbr.rel (%p866_p5) target bundleno = 21 (0x15), region = 52 }
  0x13   : > { %v1171_v0 = vmov 0.0  }
  0x14   : > { %293 = vst [vmem:[#allocation2] sm:$0xff] %v1171_v0 }
  0x15 PF: > { %v1071_v1 = vld [vmem:[%s1233_s12 + $0x38] sm:$0xff]  ;;  %v1070_v5 = vld [vmem:[%s1233_s12 + $0x30] sm:$0xff]  ;;  %v1069_v9 = vld [vmem:[%s1233_s12 + $0x28] sm:$0xff]  ;;  %p995_p6 = scmp.ne.s32.totalorder %s1219_s25, 5 }
  0x16   : > { %v1079_v2 = vld [vmem:[%s1233_s12 + $0x78] sm:$0xff]  ;;  %567 = vmatpush.bf16.msra.mxu0 %v1071_v1  ;;  %v1078_v6 = vld [vmem:[%s1233_s12 + $0x70] sm:$0xff]  ;;  %v1077_v10 = vld [vmem:[%s1233_s12 + $0x68] sm:$0xff] }
  0x17   : > { %v1087_v3 = vld [vmem:[%s1233_s12 + $0xb8] sm:$0xff]  ;;  %580 = vmatpush.bf16.msra.mxu1 %v1079_v2  ;;  %v1086_v7 = vld [vmem:[%s1233_s12 + $0xb0] sm:$0xff]  ;;  %v1085_v11 = vld [vmem:[%s1233_s12 + $0xa8] sm:$0xff] }
  0x18   : > { %v1095_v4 = vld [vmem:[%s1233_s12 + $0xf8] sm:$0xff]  ;;  %593 = vmatpush.bf16.msra.mxu2 %v1087_v3  ;;  %v1094_v8 = vld [vmem:[%s1233_s12 + $0xf0] sm:$0xff]  ;;  %v1093_v12 = vld [vmem:[%s1233_s12 + $0xe8] sm:$0xff] }
  0x19   : > { %606 = vmatpush.bf16.msra.mxu3 %v1095_v4  ;;  %v1068_v13 = vld [vmem:[%s1233_s12 + $0x20] sm:$0xff]  ;;  %v1067_v17 = vld [vmem:[%s1233_s12 + $0x18] sm:$0xff]  ;;  %v1066_v21 = vld [vmem:[%s1233_s12 + $0x10] sm:$0xff] }
  0x1a   : > { %568 = vmatpush.bf16.msra.mxu0 %v1070_v5  ;;  %v1076_v14 = vld [vmem:[%s1233_s12 + $0x60] sm:$0xff]  ;;  %v1075_v18 = vld [vmem:[%s1233_s12 + $0x58] sm:$0xff]  ;;  %v1074_v22 = vld [vmem:[%s1233_s12 + $0x50] sm:$0xff] }
  0x1b   : > { %581 = vmatpush.bf16.msra.mxu1 %v1078_v6  ;;  %v1084_v15 = vld [vmem:[%s1233_s12 + $0xa0] sm:$0xff]  ;;  %v1083_v19 = vld [vmem:[%s1233_s12 + $0x98] sm:$0xff]  ;;  %v1082_v23 = vld [vmem:[%s1233_s12 + $0x90] sm:$0xff] }
  0x1c   : > { %594 = vmatpush.bf16.msra.mxu2 %v1086_v7  ;;  %v1092_v16 = vld [vmem:[%s1233_s12 + $0xe0] sm:$0xff]  ;;  %v1091_v20 = vld [vmem:[%s1233_s12 + $0xd8] sm:$0xff]  ;;  %v1090_v24 = vld [vmem:[%s1233_s12 + $0xd0] sm:$0xff] }
  0x1d   : > { %607 = vmatpush.bf16.msra.mxu3 %v1094_v8  ;;  %v1065_v25 = vld [vmem:[%s1233_s12 + $0x8] sm:$0xff]  ;;  %v295_v27 = vld [vmem:[%s1228_s8] sm:$0xff] }
  0x1e   : > { %569 = vmatpush.bf16.msra.mxu0 %v1069_v9  ;;  %v1073_v26 = vld [vmem:[%s1233_s12 + $0x48] sm:$0xff]  ;;  %v363_v31 = vunpack.c.l.b16 %v295_v27  ;;  %v364_v32 = vunpack.c.h.b16 %v295_v27  ;;  %v1064_v33 = vld [vmem:[%s1233_s12] sm:$0xff] }
  0x1f   : > { %582 = vmatpush.bf16.msra.mxu1 %v1077_v10  ;;  %v1081_v28 = vld [vmem:[%s1233_s12 + $0x88] sm:$0xff]  ;;  %v1072_v34 = vld [vmem:[%s1233_s12 + $0x40] sm:$0xff] }
  0x20   : > { %595 = vmatpush.bf16.msra.mxu2 %v1085_v11  ;;  %v1089_v29 = vld [vmem:[%s1233_s12 + $0xc8] sm:$0xff]  ;;  %v1080_v37 = vld [vmem:[%s1233_s12 + $0x80] sm:$0xff]  ;;  %v367_v39 = vpack.c.b16 %v363_v31, %v363_v31  ;;  %v368_v40 = vpack.c.b16 %v364_v32, %v364_v32 }
  0x21   : > { %608 = vmatpush.bf16.msra.mxu3 %v1093_v12  ;;  %v296_v30 = vld [vmem:[%s1228_s8 + $0x8] sm:$0xff]  ;;  %v1088_v38 = vld [vmem:[%s1233_s12 + $0xc0] sm:$0xff] }
  0x22   : > { %570 = vmatpush.bf16.msra.mxu0 %v1068_v13  ;;  %v365_v35 = vunpack.c.l.b16 %v296_v30  ;;  %v366_v36 = vunpack.c.h.b16 %v296_v30  ;;  %v294_v51 = vld [vmem:[#allocation2] sm:$0xff] }
  0x23   : > { %583 = vmatpush.bf16.msra.mxu1 %v1076_v14 }
  0x24   : > { %596 = vmatpush.bf16.msra.mxu2 %v1084_v15  ;;  %v369_v41 = vpack.c.b16 %v365_v35, %v365_v35  ;;  %v370_v42 = vpack.c.b16 %v366_v36, %v366_v36 }
  0x25   : > { %609 = vmatpush.bf16.msra.mxu3 %v1092_v16 }
  0x26   : > { %571 = vmatpush.bf16.msra.mxu0 %v1067_v17 }
  0x27   : > { %584 = vmatpush.bf16.msra.mxu1 %v1075_v18 }
  0x28   : > { %597 = vmatpush.bf16.msra.mxu2 %v1083_v19 }
  0x29   : > { %610 = vmatpush.bf16.msra.mxu3 %v1091_v20 }
  0x2a   : > { %572 = vmatpush.bf16.msra.mxu0 %v1066_v21 }
  0x2b   : > { %585 = vmatpush.bf16.msra.mxu1 %v1074_v22 }
  0x2c   : > { %598 = vmatpush.bf16.msra.mxu2 %v1082_v23 }
  0x2d   : > { %611 = vmatpush.bf16.msra.mxu3 %v1090_v24 }
  0x2e   : > { %573 = vmatpush.bf16.msra.mxu0 %v1065_v25 }
  0x2f   : > { %586 = vmatpush.bf16.msra.mxu1 %v1073_v26 }
  0x30   : > { %599 = vmatpush.bf16.msra.mxu2 %v1081_v28 }
  0x31   : > { %612 = vmatpush.bf16.msra.mxu3 %v1089_v29 }
  0x32   : > { %574 = vmatpush.bf16.msra.mxu0 %v1064_v33 }
  0x33   : > { %587 = vmatpush.bf16.msra.mxu1 %v1072_v34 }
  0x34   : > { %600 = vmatpush.bf16.msra.mxu2 %v1080_v37 }
  0x35   : > { %613 = vmatpush.bf16.msra.mxu3 %v1088_v38  ;;  %575 = vmatmul.bf16.vlgmr.msra.gmra.mxu0 %v367_v39 }
  0x36   : > { %588 = vmatmul.bf16.vlgmr.msra.gmra.mxu1 %v368_v40 }
  0x37   : > { %601 = vmatmul.bf16.vlgmr.msra.gmra.mxu2 %v369_v41 }
  0x38   : > { %614 = vmatmul.bf16.vlgmr.msra.gmra.mxu3 %v370_v42 }
  0xb2   : > { %v576_v43 = vpop.f32.mrf.mxu0 }
  0xb3   : > { %v589_v44 = vpop.f32.mrf.mxu1 }
  0xb4   : > { %v590_v45 = vadd.f32 %v589_v44, %v576_v43 }
  0xba   : > { %v602_v46 = vpop.f32.mrf.mxu2  ;;  %v578_v49 = vpop.f32.mrf.mxu0 }
  0xbb   : > { %v615_v47 = vpop.f32.mrf.mxu3  ;;  %v603_v48 = vadd.f32 %v602_v46, %v590_v45  ;;  %v591_v50 = vpop.f32.mrf.mxu1 }
  0xbd   : > { %v616_v52 = vadd.f32 %v615_v47, %v603_v48 }
  0xbf   : > { %v619_v53 = vadd.f32 %v616_v52, %v294_v51  ;;  %624 = sbr.rel (%p995_p6) target bundleno = 494 (0x1ee), region = 56 }
  0xc1   : > { %620 = vst [vmem:[#allocation2] sm:$0xff] %v619_v53 }
  0xc2   : > { %v604_v54 = vpop.f32.mrf.mxu2 }
  0xc3   : > { %v617_v55 = vpop.f32.mrf.mxu3 }
  0xc4   : > { %v1103_v56 = vld [vmem:[%s1338_s3 + $0x38] sm:$0xff]  ;;  %v1102_v57 = vld [vmem:[%s1338_s3 + $0x30] sm:$0xff]  ;;  %v1101_v60 = vld [vmem:[%s1338_s3 + $0x28] sm:$0xff] }
  0xc5   : > { %701 = vmatpush.bf16.msra.mxu0 %v1103_v56  ;;  %v1111_v58 = vld [vmem:[%s1340_s5 + $0x38] sm:$0xff]  ;;  %v1110_v59 = vld [vmem:[%s1340_s5 + $0x30] sm:$0xff]  ;;  %v1109_v61 = vld [vmem:[%s1340_s5 + $0x28] sm:$0xff] }
  0xc6   : > { %784 = vmatpush.bf16.msra.mxu1 %v1111_v58  ;;  %v1100_v62 = vld [vmem:[%s1338_s3 + $0x20] sm:$0xff]  ;;  %v1099_v0 = vld [vmem:[%s1338_s3 + $0x18] sm:$0xff]  ;;  %v1098_v3 = vld [vmem:[%s1338_s3 + $0x10] sm:$0xff] }
  0xc7   : > { %v1108_v63 = vld [vmem:[%s1340_s5 + $0x20] sm:$0xff]  ;;  %v1107_v2 = vld [vmem:[%s1340_s5 + $0x18] sm:$0xff]  ;;  %v1106_v6 = vld [vmem:[%s1340_s5 + $0x10] sm:$0xff] }
  0xc8   : > { %v1128_v1 = vld [vmem:[%s1337_s2] ss:$0 sm:$0xff]  ;;  %v1097_v7 = vld [vmem:[%s1338_s3 + $0x8] sm:$0xff] }
  0xc9   : > { %702 = vmatpush.bf16.msra.mxu0 %v1102_v57  ;;  %v625_v4 = vld [vmem:[#allocation2] sm:$0xff]  ;;  %v1105_v11 = vld [vmem:[%s1340_s5 + $0x8] sm:$0xff] }
  0xca   : > { %785 = vmatpush.bf16.msra.mxu1 %v1110_v59  ;;  %v630_v5 = vadd.f32 %v1128_v1, %v625_v4  ;;  %v1096_v9 = vld [vmem:[%s1338_s3] sm:$0xff] }
  0xcb   : > { %v1104_v12 = vld [vmem:[%s1340_s5] sm:$0xff] }
  0xcc   : > { %v631_v8 = vmax.f32 %v630_v5, 0.0  ;;  %v1129_v13 = vld [vmem:[%s1339_s4] ss:$0 sm:$0xff] }
  0xcd   : > { %703 = vmatpush.bf16.msra.mxu0 %v1101_v60  ;;  %v1130_v19 = vld [vmem:[%s1341_s6] ss:$0 sm:$0xff] }
  0xce   : > { %786 = vmatpush.bf16.msra.mxu1 %v1109_v61  ;;  %v632_v10 = vpack.c.bf16 %v631_v8, %v631_v8 }
  0xd1   : > { %704 = vmatpush.bf16.msra.mxu0 %v1100_v62 }
  0xd2   : > { %787 = vmatpush.bf16.msra.mxu1 %v1108_v63 }
  0xd5   : > { %705 = vmatpush.bf16.msra.mxu0 %v1099_v0 }
  0xd6   : > { %788 = vmatpush.bf16.msra.mxu1 %v1107_v2 }
  0xd9   : > { %706 = vmatpush.bf16.msra.mxu0 %v1098_v3 }
  0xda   : > { %789 = vmatpush.bf16.msra.mxu1 %v1106_v6 }
  0xdd   : > { %707 = vmatpush.bf16.msra.mxu0 %v1097_v7 }
  0xde   : > { %790 = vmatpush.bf16.msra.mxu1 %v1105_v11 }
  0xe1   : > { %708 = vmatpush.bf16.msra.mxu0 %v1096_v9 }
  0xe2   : > { %791 = vmatpush.bf16.msra.mxu1 %v1104_v12 }
  0xe4   : > { %709 = vmatmul.bf16.vlgmr.msra.gmra.mxu0 %v632_v10 }
 0x161   : > { %v710_v14 = vpop.f32.mrf.mxu0 }
 0x162   : > { %v711_v15 = vadd.f32 %v1129_v13, %v710_v14 }
 0x164   : > { %v714_v16 = vmax.f32 %v711_v15, 0.0 }
 0x166   : > { %v715_v17 = vpack.c.bf16 %v714_v16, %v714_v16 }
 0x168   : > { %792 = vmatmul.bf16.vlgmr.msra.gmra.mxu1 %v715_v17 }
 0x169   : > { %v712_v18 = vpop.f32.mrf.mxu0 }
 0x1e5   : > { %v793_v20 = vpop.f32.mrf.mxu1 }
 0x1e6   : > { %v794_v21 = vadd.f32 %v1130_v19, %v793_v20 }
 0x1e8   : > { %797 = vst [vmem:[#allocation3] sm:$0xff] %v794_v21 }
 0x1ed   : > { %v795_v22 = vpop.f32.mrf.mxu1 }
 0x1ee PF: > { %p1116_p7 = scmp.eq.s32.totalorder %s1219_s25, 5  ;;  %s1172_s9 = smov [#allocation3]  }
 0x1ef   : > { %s804_s10 = sshll.u32 %s1172_s9, 4  ;;  %s806_s13 = sshll.u32 %s1342_s7, 4  ;;  %s805_s10 = int_to_ptr.vmem [resolvable:$true] %s804_s10  ;;  %s807_s13 = int_to_ptr.hbm [resolvable:$true] %s806_s13 }
 0x1f0   : > { %1113 = dma.vmem_to_hbm [thread:$0]  (%p1116_p7), %s805_s10, 128, %s807_s13, [#allocation4]  }
 0x1f1   : > { %1164 = dma.done.wait (%p1116_p7), [#allocation4], 128  }
 0x1f2   : > { %1166 = vsyncadd (%p1116_p7), [#allocation4], 4294967168 }
 0x1f3 PF: > { %s18_s24 = sadd.s32 1, %s1169_s24  }
 0x1f4   : > { %p15_p8 = scmp.ge.s32.totalorder %s18_s24, 8  }
 0x1f6   :  { %17 = sbr.rel (!%p15_p8) target bundleno = 1 (0x1), region = 86 }
 0x1fb   :  { %820 = vsyncpa [#allocation4], 1 }
 0x1fc   :  { %822 = vsyncpa [#allocation4 + $0x1], 1 }

</bundles_post_ra>
